<compile_context>
chip_gen: v7x
topology: tpu7x:2x2x1
jax: 0.10.0
libtpu: 0.0.40
codegen_flags: <defaults>
</compile_context>

<pallas_src>
import functools

import jax
import jax.numpy as jnp
from jax.experimental import pallas as pl
from jax.experimental.pallas import tpu as pltpu

_DIN = 13
_HIDDEN = 128
_DOUT = 12


def _round_up(n, m):
    return (n + m - 1) // m * m


def _mlp_kernel(x_ref, w1_ref, b1_ref, w2_ref, b2_ref, w3_ref, b3_ref,
                w4_ref, b4_ref, o_ref, *, act_dtype):
    """Fused 4-layer MLP on one batch tile.

    Matmuls run on the MXU with f32 accumulation (operands in the weights'
    dtype: f32 or bf16); bias-add stays f32 on the VPU; tanh runs in
    `act_dtype` on the EUP (f32 by default, bf16 opt-in for v6e/v7x).
    """
    mm_dtype = w1_ref.dtype  # bf16 by default (wrapper cast); f32 if opted out

    x = x_ref[...]                                                     # (tb, 13)
    h = jnp.dot(x.astype(mm_dtype), w1_ref[...],
                preferred_element_type=jnp.float32) + b1_ref[...]      # (tb, 128)
    h = jnp.tanh(h.astype(act_dtype))
    h = jnp.dot(h.astype(mm_dtype), w2_ref[...],
                preferred_element_type=jnp.float32) + b2_ref[...]      # (tb, 128)
    h = jnp.tanh(h.astype(act_dtype))
    h = jnp.dot(h.astype(mm_dtype), w3_ref[...],
                preferred_element_type=jnp.float32) + b3_ref[...]      # (tb, 128)
    h = jnp.tanh(h.astype(act_dtype))
    y = jnp.dot(h.astype(mm_dtype), w4_ref[...],
                preferred_element_type=jnp.float32) + b4_ref[...]      # (tb, 12)
    o_ref[...] = y.astype(o_ref.dtype)


@functools.partial(
    jax.jit, static_argnames=("tile_b", "use_bf16_matmul", "use_bf16_tanh"))
def simple_pinn_forward(x, params, *, tile_b=2048, use_bf16_matmul=True,
                        use_bf16_tanh=False):
    """x: (B, 13) float32.  params: w1..w4 stored (in_features, out_features)
    (transposed vs. torch) and b1..b4 stored (1, out_features).
    Returns (B, 12) float32, matching SimplePINN.forward.

    use_bf16_matmul: bf16 MXU operands, f32 accumulation (default on).
    use_bf16_tanh:   bf16 tanh on the EUP — v6e/v7x only, keep off on v5e and
                     when PINN-residual precision matters.
    """
    B, Din = x.shape
    assert Din == _DIN

    w1, b1 = params["w1"], params["b1"]
    w2, b2 = params["w2"], params["b2"]
    w3, b3 = params["w3"], params["b3"]
    w4, b4 = params["w4"], params["b4"]

    mm_dtype = jnp.bfloat16 if use_bf16_matmul else jnp.float32
    act_dtype = jnp.bfloat16 if use_bf16_tanh else jnp.float32
    # Matmul operands only; biases / elementwise math stay f32.
    w1c, w2c, w3c, w4c = (w.astype(mm_dtype) for w in (w1, w2, w3, w4))

    # --- batch tiling ---------------------------------------------------------
    tile_b = max(8, _round_up(tile_b, 8))            # multiple of 8 sublanes
    b_rounded = _round_up(B, 8)
    # Split the batch at least 2 ways whenever possible (v7x: keep both
    # TensorCores busy on the "parallel" axis), capped at tile_b.
    tile_eff = min(tile_b, max(8, _round_up(pl.cdiv(b_rounded, 2), 8)))
    n_tiles = pl.cdiv(B, tile_eff)
    B_pad = n_tiles * tile_eff
    if B_pad != B:
        # TODO(synk): for very large ragged batches, mask the tail tile in-kernel
        # instead of materializing a padded copy of x through HBM.
        x = jnp.pad(x, ((0, B_pad - B), (0, 0)))

    # Weights/biases are tiny (~200 KB total): pass them as full-array blocks
    # replicated across the batch-tile grid (constant index maps).
    # (pl.Buffered(1) on these would save ~200 KB of double-buffer VMEM; skipped
    #  as negligible next to the 32 MiB limit.)
    def full(arr):
        return pl.BlockSpec(arr.shape, lambda i: (0, 0))

    out = pl.pallas_call(
        functools.partial(_mlp_kernel, act_dtype=act_dtype),
        out_shape=jax.ShapeDtypeStruct((B_pad, _DOUT), x.dtype),
        grid_spec=pltpu.PrefetchScalarGridSpec(
            num_scalar_prefetch=0,
            grid=(n_tiles,),
            in_specs=[
                pl.BlockSpec((tile_eff, _DIN), lambda i: (i, 0)),   # x tile
                full(w1c), full(b1),
                full(w2c), full(b2),
                full(w3c), full(b3),
                full(w4c), full(b4),
            ],
            # 12 == full last dim, so this block shape is legal; narrow f32
            # writeback instead of a 128-lane padded slab + follow-up slice.
            out_specs=pl.BlockSpec((tile_eff, _DOUT), lambda i: (i, 0)),
        ),
        compiler_params=pltpu.CompilerParams(
            dimension_semantics=("parallel",),        # v7x: shard tiles over 2 TCs
            vmem_limit_bytes=32 * 1024 * 1024,        # big tiles OK on v5e too
        ),
    )(x, w1c, b1, w2c, b2, w3c, b3, w4c, b4)

    if B_pad != B:
        out = out[:B]
    return out


def init_params(key):
    """Deterministic init mimicking torch.nn.Linear defaults:
    U(-1/sqrt(fan_in), +1/sqrt(fan_in)) for both weight and bias."""
    dims = [(_DIN, _HIDDEN), (_HIDDEN, _HIDDEN), (_HIDDEN, _HIDDEN),
            (_HIDDEN, _DOUT)]
    params = {}
    keys = jax.random.split(key, 2 * len(dims))
    for idx, (fan_in, fan_out) in enumerate(dims):
        bound = 1.0 / jnp.sqrt(float(fan_in))
        w = jax.random.uniform(keys[2 * idx], (fan_in, fan_out),
                               minval=-bound, maxval=bound, dtype=jnp.float32)
        b = jax.random.uniform(keys[2 * idx + 1], (1, fan_out),
                               minval=-bound, maxval=bound, dtype=jnp.float32)
        params[f"w{idx + 1}"] = w
        params[f"b{idx + 1}"] = b
    return params


def reference_forward(x, params):
    h = jnp.tanh(x @ params["w1"] + params["b1"])
    h = jnp.tanh(h @ params["w2"] + params["b2"])
    h = jnp.tanh(h @ params["w3"] + params["b3"])
    return h @ params["w4"] + params["b4"]


if __name__ == "__main__":
    key = jax.random.PRNGKey(0)
    pkey, xkey = jax.random.split(key)
    params = init_params(pkey)

    # Small, ragged batch (not a multiple of 8 or the tile) to exercise the
    # cdiv + padding path and the >=2-tile split while staying tiny.
    batch = 20
    x = jax.random.normal(xkey, (batch, _DIN), dtype=jnp.float32)

    ref = reference_forward(x, params)

    # Default inference path: bf16 MXU operands, f32 accumulation/bias/tanh.
    out_bf16 = jax.block_until_ready(simple_pinn_forward(x, params))
    assert out_bf16.shape == (batch, _DOUT)
    assert jnp.allclose(out_bf16, ref, atol=5e-2, rtol=5e-2)

    # Full-f32 path (PINN-grade numerics) must match the reference tightly.
    out_f32 = jax.block_until_ready(
        simple_pinn_forward(x, params, use_bf16_matmul=False))
    assert out_f32.shape == (batch, _DOUT)
    assert jnp.allclose(out_f32, ref, atol=1e-5, rtol=1e-5)

    print("KERNEL_OK")
</pallas_src>

<mosaic_0001>
module attributes {stable_mosaic.version = 11 : i64} {
  func.func @_mlp_kernel(%arg0: i32, %arg1: memref<16x13xf32, #tpu.memory_space<vmem>>, %arg2: memref<13x128xbf16, #tpu.memory_space<vmem>>, %arg3: memref<1x128xf32, #tpu.memory_space<vmem>>, %arg4: memref<128x128xbf16, #tpu.memory_space<vmem>>, %arg5: memref<1x128xf32, #tpu.memory_space<vmem>>, %arg6: memref<128x128xbf16, #tpu.memory_space<vmem>>, %arg7: memref<1x128xf32, #tpu.memory_space<vmem>>, %arg8: memref<128x12xbf16, #tpu.memory_space<vmem>>, %arg9: memref<1x12xf32, #tpu.memory_space<vmem>>, %arg10: memref<16x12xf32, #tpu.memory_space<vmem>>) attributes {dimension_semantics = [#tpu.dimension_semantics<parallel>], iteration_bounds = array<i64: 2>, scalar_prefetch = 0 : i64, scratch_operands = 0 : i64, tpu.core_type = #tpu.core_type<tc>, window_params = [{transform_indices = @transform_0, window_bounds = array<i64: 16, 13>}, {pipeline_mode = #tpu.pipeline_mode<synchronous>, transform_indices = @transform_1, window_bounds = array<i64: 13, 128>}, {pipeline_mode = #tpu.pipeline_mode<synchronous>, transform_indices = @transform_2, window_bounds = array<i64: 1, 128>}, {pipeline_mode = #tpu.pipeline_mode<synchronous>, transform_indices = @transform_3, window_bounds = array<i64: 128, 128>}, {pipeline_mode = #tpu.pipeline_mode<synchronous>, transform_indices = @transform_4, window_bounds = array<i64: 1, 128>}, {pipeline_mode = #tpu.pipeline_mode<synchronous>, transform_indices = @transform_5, window_bounds = array<i64: 128, 128>}, {pipeline_mode = #tpu.pipeline_mode<synchronous>, transform_indices = @transform_6, window_bounds = array<i64: 1, 128>}, {pipeline_mode = #tpu.pipeline_mode<synchronous>, transform_indices = @transform_7, window_bounds = array<i64: 128, 12>}, {pipeline_mode = #tpu.pipeline_mode<synchronous>, transform_indices = @transform_8, window_bounds = array<i64: 1, 12>}, {transform_indices = @transform_9, window_bounds = array<i64: 16, 12>}]} {
    %c0 = arith.constant 0 : index
    %c0_0 = arith.constant 0 : index
    %0 = vector.load %arg1[%c0, %c0_0] : memref<16x13xf32, #tpu.memory_space<vmem>>, vector<16x13xf32>
    %1 = arith.truncf %0 : vector<16x13xf32> to vector<16x13xbf16>
    %c0_1 = arith.constant 0 : index
    %c0_2 = arith.constant 0 : index
    %2 = vector.load %arg2[%c0_1, %c0_2] : memref<13x128xbf16, #tpu.memory_space<vmem>>, vector<13x128xbf16>
    %cst = arith.constant dense<0.000000e+00> : vector<16x128xf32>
    %3 = tpu.matmul %1, %2, %cst {dimension_numbers = #tpu.dot_dimension_numbers<[1], [0], [0], [1], [0, 0, 1, 1], [], []>} : vector<16x13xbf16>, vector<13x128xbf16>, vector<16x128xf32> -> vector<16x128xf32>
    %c0_3 = arith.constant 0 : index
    %c0_4 = arith.constant 0 : index
    %4 = vector.load %arg3[%c0_3, %c0_4] : memref<1x128xf32, #tpu.memory_space<vmem>>, vector<1x128xf32>
    %5 = vector.broadcast %4 : vector<1x128xf32> to vector<16x128xf32>
    %6 = arith.addf %3, %5 : vector<16x128xf32>
    %7 = math.tanh %6 : vector<16x128xf32>
    %8 = arith.truncf %7 : vector<16x128xf32> to vector<16x128xbf16>
    %c0_5 = arith.constant 0 : index
    %c0_6 = arith.constant 0 : index
    %9 = vector.load %arg4[%c0_5, %c0_6] : memref<128x128xbf16, #tpu.memory_space<vmem>>, vector<128x128xbf16>
    %cst_7 = arith.constant dense<0.000000e+00> : vector<16x128xf32>
    %10 = tpu.matmul %8, %9, %cst_7 {dimension_numbers = #tpu.dot_dimension_numbers<[1], [0], [0], [1], [0, 0, 1, 1], [], []>} : vector<16x128xbf16>, vector<128x128xbf16>, vector<16x128xf32> -> vector<16x128xf32>
    %c0_8 = arith.constant 0 : index
    %c0_9 = arith.constant 0 : index
    %11 = vector.load %arg5[%c0_8, %c0_9] : memref<1x128xf32, #tpu.memory_space<vmem>>, vector<1x128xf32>
    %12 = vector.broadcast %11 : vector<1x128xf32> to vector<16x128xf32>
    %13 = arith.addf %10, %12 : vector<16x128xf32>
    %14 = math.tanh %13 : vector<16x128xf32>
    %15 = arith.truncf %14 : vector<16x128xf32> to vector<16x128xbf16>
    %c0_10 = arith.constant 0 : index
    %c0_11 = arith.constant 0 : index
    %16 = vector.load %arg6[%c0_10, %c0_11] : memref<128x128xbf16, #tpu.memory_space<vmem>>, vector<128x128xbf16>
    %cst_12 = arith.constant dense<0.000000e+00> : vector<16x128xf32>
    %17 = tpu.matmul %15, %16, %cst_12 {dimension_numbers = #tpu.dot_dimension_numbers<[1], [0], [0], [1], [0, 0, 1, 1], [], []>} : vector<16x128xbf16>, vector<128x128xbf16>, vector<16x128xf32> -> vector<16x128xf32>
    %c0_13 = arith.constant 0 : index
    %c0_14 = arith.constant 0 : index
    %18 = vector.load %arg7[%c0_13, %c0_14] : memref<1x128xf32, #tpu.memory_space<vmem>>, vector<1x128xf32>
    %19 = vector.broadcast %18 : vector<1x128xf32> to vector<16x128xf32>
    %20 = arith.addf %17, %19 : vector<16x128xf32>
    %21 = math.tanh %20 : vector<16x128xf32>
    %22 = arith.truncf %21 : vector<16x128xf32> to vector<16x128xbf16>
    %c0_15 = arith.constant 0 : index
    %c0_16 = arith.constant 0 : index
    %23 = vector.load %arg8[%c0_15, %c0_16] : memref<128x12xbf16, #tpu.memory_space<vmem>>, vector<128x12xbf16>
    %cst_17 = arith.constant dense<0.000000e+00> : vector<16x12xf32>
    %24 = tpu.matmul %22, %23, %cst_17 {dimension_numbers = #tpu.dot_dimension_numbers<[1], [0], [0], [1], [0, 0, 1, 1], [], []>} : vector<16x128xbf16>, vector<128x12xbf16>, vector<16x12xf32> -> vector<16x12xf32>
    %c0_18 = arith.constant 0 : index
    %c0_19 = arith.constant 0 : index
    %25 = vector.load %arg9[%c0_18, %c0_19] : memref<1x12xf32, #tpu.memory_space<vmem>>, vector<1x12xf32>
    %26 = vector.broadcast %25 : vector<1x12xf32> to vector<16x12xf32>
    %27 = arith.addf %24, %26 : vector<16x12xf32>
    %c0_20 = arith.constant 0 : index
    %c0_21 = arith.constant 0 : index
    %28 = vector.load %arg10[%c0_20, %c0_21] : memref<16x12xf32, #tpu.memory_space<vmem>>, vector<16x12xf32>
    tpu.vector_store %arg10[%c0_20, %c0_21], %27 {strides = array<i32>} : memref<16x12xf32, #tpu.memory_space<vmem>>, vector<16x12xf32>,
    return
  }
  func.func @transform_0(%arg0: i32) -> (i32, i32) {
    %c0_i32 = arith.constant 0 : i32
    %c0_i32_0 = arith.constant 0 : i32
    return %arg0, %c0_i32 : i32, i32
  }
  func.func @transform_1(%arg0: i32) -> (i32, i32) {
    %c0_i32 = arith.constant 0 : i32
    %c0_i32_0 = arith.constant 0 : i32
    %c0_i32_1 = arith.constant 0 : i32
    return %c0_i32, %c0_i32_0 : i32, i32
  }
  func.func @transform_2(%arg0: i32) -> (i32, i32) {
    %c0_i32 = arith.constant 0 : i32
    %c0_i32_0 = arith.constant 0 : i32
    %c0_i32_1 = arith.constant 0 : i32
    return %c0_i32, %c0_i32_0 : i32, i32
  }
  func.func @transform_3(%arg0: i32) -> (i32, i32) {
    %c0_i32 = arith.constant 0 : i32
    %c0_i32_0 = arith.constant 0 : i32
    %c0_i32_1 = arith.constant 0 : i32
    return %c0_i32, %c0_i32_0 : i32, i32
  }
  func.func @transform_4(%arg0: i32) -> (i32, i32) {
    %c0_i32 = arith.constant 0 : i32
    %c0_i32_0 = arith.constant 0 : i32
    %c0_i32_1 = arith.constant 0 : i32
    return %c0_i32, %c0_i32_0 : i32, i32
  }
  func.func @transform_5(%arg0: i32) -> (i32, i32) {
    %c0_i32 = arith.constant 0 : i32
    %c0_i32_0 = arith.constant 0 : i32
    %c0_i32_1 = arith.constant 0 : i32
    return %c0_i32, %c0_i32_0 : i32, i32
  }
  func.func @transform_6(%arg0: i32) -> (i32, i32) {
    %c0_i32 = arith.constant 0 : i32
    %c0_i32_0 = arith.constant 0 : i32
    %c0_i32_1 = arith.constant 0 : i32
    return %c0_i32, %c0_i32_0 : i32, i32
  }
  func.func @transform_7(%arg0: i32) -> (i32, i32) {
    %c0_i32 = arith.constant 0 : i32
    %c0_i32_0 = arith.constant 0 : i32
    %c0_i32_1 = arith.constant 0 : i32
    return %c0_i32, %c0_i32_0 : i32, i32
  }
  func.func @transform_8(%arg0: i32) -> (i32, i32) {
    %c0_i32 = arith.constant 0 : i32
    %c0_i32_0 = arith.constant 0 : i32
    %c0_i32_1 = arith.constant 0 : i32
    return %c0_i32, %c0_i32_0 : i32, i32
  }
  func.func @transform_9(%arg0: i32) -> (i32, i32) {
    %c0_i32 = arith.constant 0 : i32
    %c0_i32_0 = arith.constant 0 : i32
    return %arg0, %c0_i32 : i32, i32
  }
}

</mosaic_0001>

<bundles_post_ra>
// kernel: simple_pinn_forward.1
= control target key start
LH: loop header
LB: loop body
LE: loop exit
PB: predicated region body
PF: predicated region fallthrough
CT: control target
= control target key end

     0   :  { %s1055_s30 = smov 0   ;;  %s1199_s0 = inlined_call_operand.vmem [shape: f32[32,13], index: 0, kind: input, shape index: {}]   ;;  %s1200_s1 = inlined_call_operand.vmem [shape: bf16[13,128], index: 1, kind: input, shape index: {}]   ;;  %s1201_s2 = inlined_call_operand.vmem [shape: f32[1,128], index: 2, kind: input, shape index: {}]   ;;  %s1202_s3 = inlined_call_operand.vmem [shape: bf16[128,128], index: 3, kind: input, shape index: {}]   ;;  %s1203_s4 = inlined_call_operand.vmem [shape: f32[1,128], index: 4, kind: input, shape index: {}]   ;;  %s1204_s5 = inlined_call_operand.vmem [shape: bf16[128,128], index: 5, kind: input, shape index: {}]   ;;  %s1205_s6 = inlined_call_operand.vmem [shape: f32[1,128], index: 6, kind: input, shape index: {}]   ;;  %s1206_s7 = inlined_call_operand.vmem [shape: bf16[128,12], index: 7, kind: input, shape index: {}]   ;;  %s1207_s8 = inlined_call_operand.vmem [shape: f32[1,12], index: 8, kind: input, shape index: {}]   ;;  %s1208_s9 = inlined_call_operand.vmem [shape: f32[32,12], index: 9, kind: output, shape index: {}]  }
   0x1 LB: > { %s810_s10 = sadd.s32 4294967295, %s1000_s30   ;;  %p814_p0 = scmp.ge.s32.totalorder %s1000_s30, 1  ;;  %s1000_s30 = sphi %s1055_s30, %s19_s30  }
   0x2   : > { %p288_p1 = scmp.lt.s32.totalorder %s1000_s30, 3 }
   0x4   : > { %p289_p2 = pnand %p814_p0, %p288_p1 }
   0x5   : > { %vm358_vm0 = vcmask (!%p289_p2), 1045504   ;;  %v1002_v0 = vmov (!%p289_p2), 0.0   ;;  %v957_v1 = vld [vmem:[%s1200_s1] sm:$0x7f] (!%p289_p2)   ;;  %vm359_vm1 = vcmask (!%p289_p2), 1046528   ;;  %s815_s13 = sshll.u32 (!%p289_p2), %s810_s10, 1 }
   0x6   : > { %292 = sbr.rel (%p289_p2) target bundleno = 923 (0x39b), region = 56  ;;  %880 = vmatprep.subr.bf16.mxu0 (!%p289_p2), %v1002_v0  ;;  %886 = vmatprep.subr.bf16.mxu1 (!%p289_p2), %v1002_v0  ;;  %v1003_v2 = vmov (!%p289_p2), 65535   ;;  %vm1004_vm2 = vmmov (!%p289_p2), 0   ;;  %p325_p3 = scmp.lt.s32.totalorder (!%p289_p2), %s815_s13, 3  ;;  %v958_v4 = vld [vmem:[%s1202_s3] sm:$0xff] (!%p289_p2)   ;;  %v959_v7 = vld [vmem:[%s1202_s3 + $0x8] sm:$0xff] (!%p289_p2)  }
   0x7   : > { %v360_v3 = vsel (!%p289_p2), %vm358_vm0, 4294967295, %v1003_v2  ;;  %882 = vmatprep.mubr.msk.bf16.mxu0 (!%p289_p2), %vm1004_vm2, %v1002_v0  ;;  %902 = vmatprep.mubr.msk.bf16.mxu1 (!%p289_p2), %vm1004_vm2, %v1002_v0  ;;  %v960_v8 = vld [vmem:[%s1202_s3 + $0x10] sm:$0xff] (!%p289_p2)   ;;  %vm354_vm3 = vcmask (!%p289_p2), 105472   ;;  %v961_v12 = vld [vmem:[%s1202_s3 + $0x18] sm:$0xff] (!%p289_p2)   ;;  %v962_v13 = vld [vmem:[%s1202_s3 + $0x20] sm:$0xff] (!%p289_p2)   ;;  %vm751_vm4 = vcmask (!%p289_p2), 97280  }
   0x8   : > { %v361_v5 = vsel (!%p289_p2), %vm359_vm1, %v360_v3, 0  ;;  %887 = vmatpush3.bf16.msra.mxu1 (!%p289_p2), %v958_v4  ;;  %v963_v14 = vld [vmem:[%s1202_s3 + $0x28] sm:$0xff] (!%p289_p2)   ;;  %v964_v15 = vld [vmem:[%s1202_s3 + $0x30] sm:$0xff] (!%p289_p2)   ;;  %v965_v16 = vld [vmem:[%s1202_s3 + $0x38] sm:$0xff] (!%p289_p2)  }
   0x9   : > { %v363_v6 = vand.u32 (!%p289_p2), %v957_v1, %v361_v5  ;;  %888 = vmatprep.subr.bf16.mxu1 (!%p289_p2), %v1002_v0  ;;  %v966_v17 = vld [vmem:[%s1204_s5] sm:$0xff] (!%p289_p2)   ;;  %v967_v18 = vld [vmem:[%s1204_s5 + $0x8] sm:$0xff] (!%p289_p2)   ;;  %v968_v19 = vld [vmem:[%s1204_s5 + $0x10] sm:$0xff] (!%p289_p2)  }
   0xa   : > { %v969_v20 = vld [vmem:[%s1204_s5 + $0x18] sm:$0xff] (!%p289_p2)   ;;  %v819_v21 = vld [vmem:[%s1201_s2] ss:$0 sm:$0xff] (!%p289_p2)  ;;  %v971_v32 = vld [vmem:[%s1204_s5 + $0x28] sm:$0xff] (!%p289_p2)  }
   0xb   : > { %881 = vmatpush3.bf16.msra.mxu0 (!%p289_p2), %v363_v6  ;;  %v970_v31 = vld [vmem:[%s1204_s5 + $0x20] sm:$0xff] (!%p289_p2)   ;;  %v972_v33 = vld [vmem:[%s1204_s5 + $0x30] sm:$0xff] (!%p289_p2)   ;;  %v973_v34 = vld [vmem:[%s1204_s5 + $0x38] sm:$0xff] (!%p289_p2)  }
   0xc   : > { %906 = vmatprep.subr.bf16.mxu0 (!%p289_p2), %v1002_v0  ;;  %889 = vmatpush3.bf16.msra.mxu1 (!%p289_p2), %v959_v7  ;;  %v974_v35 = vld [vmem:[%s1206_s7] sm:$0xff] (!%p289_p2)   ;;  %v975_v36 = vld [vmem:[%s1206_s7 + $0x8] sm:$0xff] (!%p289_p2)   ;;  %v976_v37 = vld [vmem:[%s1206_s7 + $0x10] sm:$0xff] (!%p289_p2)  }
   0xd   : > { %s1210_s13 = smov (!%p325_p3, %s815_s13), 3  ;;  %890 = vmatprep.subr.bf16.mxu1 %v1002_v0  ;;  %v977_v38 = vld [vmem:[%s1206_s7 + $0x18] sm:$0xff]   ;;  %v822_v39 = vld [vmem:[%s1203_s4] ss:$0 sm:$0xff]  ;;  %v979_v50 = vld [vmem:[%s1206_s7 + $0x28] sm:$0xff]  }
   0xe   : > { %s816_s18 = sshll.u32 %s1210_s13, 3  ;;  %v978_v49 = vld [vmem:[%s1206_s7 + $0x20] sm:$0xff]   ;;  %v980_v51 = vld [vmem:[%s1206_s7 + $0x30] sm:$0xff]   ;;  %v981_v52 = vld [vmem:[%s1206_s7 + $0x38] sm:$0xff]  }
   0xf   : > { %s328_s23 = scalar_lea.vmem %s1199_s0, %s816_s18  ;;  %v831_v53 = vld [vmem:[%s1205_s6] ss:$0 sm:$0xff]  ;;  %s334_s22 = scalar_lea.vmem %s1208_s9, %s816_s18 }
  0x10   : > { %v337_v9 = vld [vmem:[%s328_s23] sm:$0xff]  ;;  %v338_v10 = vld [vmem:[%s328_s23 + $0x8] sm:$0xff]  ;;  %891 = vmatpush3.bf16.msra.mxu1 %v960_v8 }
  0x11   : > { %v339_v11 = vpack.c.bf16 %v338_v10, %v337_v9  ;;  %892 = vmatprep.subr.bf16.mxu1 %v1002_v0  ;;  %v840_v63 = vld [vmem:[%s1207_s8] ss:$0 sm:$0xff] }
  0x13   : > { %883 = vmatmul.mubr.msk.bf16.vlgmr.msra.gmra.mrb[0].mxu0 %vm354_vm3, %v339_v11 }
  0x14   : > { %922 = vmatprep.mubr.msk.bf16.mxu0 %vm1004_vm2, %v1002_v0  ;;  %893 = vmatpush3.bf16.msra.mxu1 %v961_v12 }
  0x15   : > { %894 = vmatprep.subr.bf16.mxu1 %v1002_v0  ;;  %907 = vmatpush3.bf16.msra.mxu0 %v966_v17 }
  0x16   : > { %908 = vmatprep.subr.bf16.mxu0 %v1002_v0 }
  0x18   : > { %895 = vmatpush3.bf16.msra.mxu1 %v962_v13 }
  0x19   : > { %896 = vmatprep.subr.bf16.mxu1 %v1002_v0  ;;  %909 = vmatpush3.bf16.msra.mxu0 %v967_v18 }
  0x1a   : > { %910 = vmatprep.subr.bf16.mxu0 %v1002_v0 }
  0x1c   : > { %897 = vmatpush3.bf16.msra.mxu1 %v963_v14 }
  0x1d   : > { %898 = vmatprep.subr.bf16.mxu1 %v1002_v0  ;;  %911 = vmatpush3.bf16.msra.mxu0 %v968_v19 }
  0x1e   : > { %912 = vmatprep.subr.bf16.mxu0 %v1002_v0 }
  0x20   : > { %899 = vmatpush3.bf16.msra.mxu1 %v964_v15 }
  0x21   : > { %900 = vmatprep.subr.bf16.mxu1 %v1002_v0  ;;  %913 = vmatpush3.bf16.msra.mxu0 %v969_v20 }
  0x22   : > { %914 = vmatprep.subr.bf16.mxu0 %v1002_v0 }
  0x24   : > { %901 = vmatpush3.bf16.msra.mxu1 %v965_v16 }
  0x25   : > { %926 = vmatprep.subr.bf16.mxu1 %v1002_v0  ;;  %915 = vmatpush3.bf16.msra.mxu0 %v970_v31 }
  0x26   : > { %916 = vmatprep.subr.bf16.mxu0 %v1002_v0 }
  0x29   : > { %917 = vmatpush3.bf16.msra.mxu0 %v971_v32 }
  0x2a   : > { %918 = vmatprep.subr.bf16.mxu0 %v1002_v0 }
  0x2d   : > { %919 = vmatpush3.bf16.msra.mxu0 %v972_v33 }
  0x2e   : > { %920 = vmatprep.subr.bf16.mxu0 %v1002_v0 }
  0x31   : > { %921 = vmatpush3.bf16.msra.mxu0 %v973_v34 }
  0xe6   : > { %v399_v22 = vpop.f32.mrb[0].mxu0 }
  0xe7   : > { %v400_v23 = vadd.f32 %v819_v21, %v399_v22  ;;  %v884_v24 = vpop.f32.mrb[1].mxu0 }
  0xe8   : > { %v402_v25 = vpop.f32.mrb[2].mxu0 }
  0xe9   : > { %v403_v26 = vadd.f32 %v819_v21, %v402_v25  ;;  %v885_v27 = vpop.f32.mrb[3].mxu0  ;;  %982 = vtanh.f32 %v400_v23 }
  0xeb   : > { %984 = vtanh.f32 %v403_v26 }
  0xf3   : > { %v983_v28 = vpop.eup %982 }
  0xf5   : > { %v985_v29 = vpop.eup %984 }
  0xf6   : > { %v408_v30 = vpack.c.bf16 %v985_v29, %v983_v28 }
  0xf8   : > { %903 = vmatmul.mubr.bf16.vlgmr.msra.gmra.mrb[0].mxu1 %v408_v30 }
  0xf9   : > { %942 = vmatprep.mubr.msk.bf16.mxu1 %vm1004_vm2, %v1002_v0  ;;  %927 = vmatpush3.bf16.msra.mxu1 %v974_v35 }
  0xfa   : > { %928 = vmatprep.subr.bf16.mxu1 %v1002_v0 }
  0xfd   : > { %929 = vmatpush3.bf16.msra.mxu1 %v975_v36 }
  0xfe   : > { %930 = vmatprep.subr.bf16.mxu1 %v1002_v0 }
 0x101   : > { %931 = vmatpush3.bf16.msra.mxu1 %v976_v37 }
 0x102   : > { %932 = vmatprep.subr.bf16.mxu1 %v1002_v0 }
 0x105   : > { %933 = vmatpush3.bf16.msra.mxu1 %v977_v38 }
 0x106   : > { %934 = vmatprep.subr.bf16.mxu1 %v1002_v0 }
 0x109   : > { %935 = vmatpush3.bf16.msra.mxu1 %v978_v49 }
 0x10a   : > { %936 = vmatprep.subr.bf16.mxu1 %v1002_v0 }
 0x10d   : > { %937 = vmatpush3.bf16.msra.mxu1 %v979_v50 }
 0x10e   : > { %938 = vmatprep.subr.bf16.mxu1 %v1002_v0 }
 0x111   : > { %939 = vmatpush3.bf16.msra.mxu1 %v980_v51 }
 0x112   : > { %940 = vmatprep.subr.bf16.mxu1 %v1002_v0 }
 0x115   : > { %941 = vmatpush3.bf16.msra.mxu1 %v981_v52 }
 0x1cb   : > { %v514_v40 = vpop.f32.mrb[0].mxu1 }
 0x1cc   : > { %v515_v41 = vadd.f32 %v822_v39, %v514_v40  ;;  %v904_v42 = vpop.f32.mrb[1].mxu1 }
 0x1cd   : > { %v517_v43 = vpop.f32.mrb[2].mxu1 }
 0x1ce   : > { %v518_v44 = vadd.f32 %v822_v39, %v517_v43  ;;  %v905_v45 = vpop.f32.mrb[3].mxu1  ;;  %986 = vtanh.f32 %v515_v41 }
 0x1d0   : > { %988 = vtanh.f32 %v518_v44 }
 0x1d8   : > { %v987_v46 = vpop.eup %986 }
 0x1da   : > { %v989_v47 = vpop.eup %988 }
 0x1db   : > { %v523_v48 = vpack.c.bf16 %v989_v47, %v987_v46 }
 0x1dd   : > { %923 = vmatmul.mubr.bf16.vlgmr.msra.gmra.mrb[4].mxu0 %v523_v48 }
 0x2b0   : > { %v629_v54 = vpop.f32.mrb[4].mxu0 }
 0x2b1   : > { %v630_v55 = vadd.f32 %v831_v53, %v629_v54  ;;  %v924_v56 = vpop.f32.mrb[5].mxu0 }
 0x2b2   : > { %v632_v57 = vpop.f32.mrb[6].mxu0 }
 0x2b3   : > { %v633_v58 = vadd.f32 %v831_v53, %v632_v57  ;;  %v925_v59 = vpop.f32.mrb[7].mxu0  ;;  %990 = vtanh.f32 %v630_v55 }
 0x2b5   : > { %992 = vtanh.f32 %v633_v58 }
 0x2bd   : > { %v991_v60 = vpop.eup %990 }
 0x2bf   : > { %v993_v61 = vpop.eup %992 }
 0x2c0   : > { %v638_v62 = vpack.c.bf16 %v993_v61, %v991_v60 }
 0x2c2   : > { %943 = vmatmul.mubr.bf16.vlgmr.msra.gmra.mrb[4].mxu1 %v638_v62 }
 0x395   : > { %v744_v0 = vpop.f32.mrb[4].mxu1 }
 0x396   : > { %v745_v1 = vadd.f32 %v840_v63, %v744_v0  ;;  %v944_v2 = vpop.f32.mrb[5].mxu1 }
 0x397   : > { %v747_v3 = vpop.f32.mrb[6].mxu1 }
 0x398   : > { %752 = vst.msk [vmem:[%s334_s22] sm:$0xff] %vm751_vm4, %v745_v1  ;;  %v748_v4 = vadd.f32 %v840_v63, %v747_v3  ;;  %v945_v5 = vpop.f32.mrb[7].mxu1 }
 0x39a   : > { %753 = vst.msk [vmem:[%s334_s22 + $0x8] sm:$0xff] %vm751_vm4, %v748_v4 }
 0x39b PF: > { %s19_s30 = sadd.s32 1, %s1000_s30  }
 0x39c   : > { %p16_p4 = scmp.ge.s32.totalorder %s19_s30, 4  }
 0x39e   :  { %18 = sbr.rel (!%p16_p4) target bundleno = 1 (0x1), region = 86 }

</bundles_post_ra>
